<compile_context>
chip_gen: v5e
topology: v5e:2x2
jax: 0.10.0
libtpu: 0.0.40
codegen_flags: <defaults>
</compile_context>

<pallas_src>
import functools

import jax
import jax.numpy as jnp
from jax import lax
from jax.experimental import pallas as pl
from jax.experimental.pallas import tpu as pltpu


# ---------------------------------------------------------------------------
# Kernel body
# ---------------------------------------------------------------------------
def _linear_bias_kernel(x_ref, w_ref, b_ref, o_ref):
    """One (tm, tn) output tile of y = x @ W + b.

    x_ref: (tm, K)   activations
    w_ref: (K, tn)   weight, pre-transposed at parameter setup (typically bf16)
    b_ref: (1, tn)   bias (f32)
    o_ref: (tm, tn)  output tile
    """
    # Cast activations to the weight dtype so the MXU runs in its native
    # low-precision mode (bf16 x bf16 -> f32 accumulate).  No-op for f32 W.
    lhs = x_ref[...].astype(w_ref.dtype)
    acc = jnp.dot(lhs, w_ref[...], preferred_element_type=jnp.float32)
    o_ref[...] = (acc + b_ref[...].astype(jnp.float32)).astype(o_ref.dtype)


# ---------------------------------------------------------------------------
# Tiling helpers
# ---------------------------------------------------------------------------
def _largest_divisor_tile(dim, cap, gran):
    """Largest divisor of `dim` that is <= cap and a multiple of `gran`.

    If dim <= cap, the full extent is used (full-extent blocks are always legal
    regardless of the (8,128) granularity rule).  Falls back to the full
    extent if no suitable divisor exists.
    """
    if dim <= cap:
        return dim
    t = (min(cap, dim) // gran) * gran
    while t >= gran:
        if dim % t == 0:
            return t
        t -= gran
    return dim  # fallback: full extent


def _vmem_bytes(tm, tn, K, x_it, w_it, o_it, b_it, nbuf=2):
    """Double-buffered VMEM footprint of one grid step."""
    return nbuf * (tm * K * x_it + K * tn * w_it + tm * tn * o_it + tn * b_it)


def _vmem_capacity_bytes():
    try:
        return int(pltpu.get_tpu_info().vmem_capacity_bytes)
    except Exception:
        return 64 << 20  # conservative: v7x per-TC physical VMEM


# ---------------------------------------------------------------------------
# Parameter setup (one-time, amortized) and forward wrapper
# ---------------------------------------------------------------------------
def prepare_clip_text_projector_params(weight, bias, param_dtype=jnp.bfloat16):
    """Convert PyTorch-layout nn.Linear params for the kernel.

    weight: (N, K)  ->  returned as (K, N) in `param_dtype` (bf16 by default,
                        halving weight HBM traffic; f32 accumulation keeps
                        projector-level accuracy).
    bias:   (N,)    ->  returned as (1, N) f32 (tiny; kept full precision).
    """
    w_kn = jnp.asarray(weight).T.astype(param_dtype)     # one-time transpose+cast
    b2 = jnp.asarray(bias).reshape(1, -1).astype(jnp.float32)
    return w_kn, b2


def clip_text_projector(x, w_kn, b2, *, tm=None, tn=None, out_dtype=None):
    """y = x @ w_kn + b2   (== nn.Linear(x) with w_kn = weight.T).

    x:    (M, K)
    w_kn: (K, N)  prepared weight (see prepare_clip_text_projector_params)
    b2:   (1, N)  prepared bias
    returns (M, N) in `out_dtype` (defaults to x.dtype)
    """
    M, K = x.shape
    K2, N = w_kn.shape
    assert K == K2 and b2.shape == (1, N)
    out_dtype = x.dtype if out_dtype is None else out_dtype

    x_it = jnp.dtype(x.dtype).itemsize
    w_it = jnp.dtype(w_kn.dtype).itemsize
    b_it = jnp.dtype(b2.dtype).itemsize
    o_it = jnp.dtype(out_dtype).itemsize

    vmem_cap = _vmem_capacity_bytes()
    budget = (vmem_cap * 3) // 8          # ~24 MiB on v7x, ~48 MiB on v5e/v6e

    if tn is None:
        # Keep >= 2 blocks on the leading (parallel) axis when possible so both
        # v7x TensorCores get work; lane-dense (multiple of 128) otherwise.
        tn_cap = N if N < 256 else max(128, N // 2)
        tn_cap = min(tn_cap, max(128, budget // (2 * K * w_it)))  # W stripe fits
        tn = _largest_divisor_tile(N, tn_cap, 128)
    if tm is None:
        fixed = 2 * (K * tn * w_it + tn * b_it)           # weight + bias stripes
        per_tm = 2 * (K * x_it + tn * o_it)               # x stripe + out tile
        tm_cap = max(8, (budget - fixed) // max(per_tm, 1))
        tm = _largest_divisor_tile(M, min(tm_cap, 2048), 8)
    assert M % tm == 0 and N % tn == 0

    vmem_needed = _vmem_bytes(tm, tn, K, x_it, w_it, o_it, b_it)
    vmem_limit = int(min(max(vmem_needed + (4 << 20), 16 << 20), vmem_cap))

    n_blocks = N // tn
    m_blocks = M // tm
    grid = (n_blocks, m_blocks)           # N outer: weight streamed once from HBM

    cost = pl.CostEstimate(
        flops=2 * M * K * N,
        transcendentals=0,
        bytes_accessed=(
            M * K * x_it * n_blocks       # x re-streamed once per outer block
            + K * N * w_it                # weight streamed exactly once
            + N * b_it
            + M * N * o_it
        ),
    )

    return pl.pallas_call(
        _linear_bias_kernel,
        out_shape=jax.ShapeDtypeStruct((M, N), out_dtype),
        grid_spec=pltpu.PrefetchScalarGridSpec(
            num_scalar_prefetch=0,
            grid=grid,
            in_specs=[
                pl.BlockSpec((tm, K), lambda j, i: (i, 0)),   # x tile (full K)
                pl.BlockSpec((K, tn), lambda j, i: (0, j)),   # weight stripe
                pl.BlockSpec((1, tn), lambda j, i: (0, j)),   # bias tile
            ],
            out_specs=pl.BlockSpec((tm, tn), lambda j, i: (i, j)),
        ),
        compiler_params=pltpu.CompilerParams(
            dimension_semantics=("parallel", "parallel"),
            vmem_limit_bytes=vmem_limit,
        ),
        cost_estimate=cost,
    )(x, w_kn, b2)


# ---------------------------------------------------------------------------
# Self-test
# ---------------------------------------------------------------------------
if __name__ == "__main__":
    # Module defaults: input_dim=512 -> output_dim=1024; small batch of 8.
    M, K, N = 8, 512, 1024

    key = jax.random.PRNGKey(0)
    kx, kw, kb = jax.random.split(key, 3)

    x = jax.random.normal(kx, (M, K), dtype=jnp.float32)
    # Same shapes/semantics as nn.Linear(K, N): weight (N, K), bias (N,)
    weight = jax.random.normal(kw, (N, K), dtype=jnp.float32) * (1.0 / K ** 0.5)
    bias = jax.random.normal(kb, (N,), dtype=jnp.float32) * 0.01

    # One-time parameter setup (bf16 storage + pre-transpose), amortized.
    w_kn, b2 = prepare_clip_text_projector_params(weight, bias)

    fwd = jax.jit(functools.partial(clip_text_projector))
    y = fwd(x, w_kn, b2)
    y = jax.block_until_ready(y)

    # Reference 1: exact semantics of what the kernel computes (bf16 weights,
    # bf16-cast activations, f32 accumulation) -- tight tolerance.
    y_ref_bf16 = (
        jnp.dot(
            x.astype(jnp.bfloat16).astype(jnp.float32),
            w_kn.astype(jnp.float32),
            precision=lax.Precision.HIGHEST,
        )
        + b2
    )
    # Reference 2: original f32 nn.Linear forward -- loose tolerance for the
    # bf16 weight-storage quantization.
    y_ref_f32 = jnp.dot(x, weight.T, precision=lax.Precision.HIGHEST) + bias

    assert y.shape == (M, N)
    assert jnp.allclose(y, y_ref_bf16, atol=2e-3, rtol=2e-3)
    assert jnp.allclose(y, y_ref_f32, atol=3e-2, rtol=3e-2)

    print("KERNEL_OK")
</pallas_src>

<mosaic_0001>
module attributes {stable_mosaic.version = 11 : i64} {
  func.func @_linear_bias_kernel(%arg0: i32, %arg1: i32, %arg2: memref<8x512xf32, #tpu.memory_space<vmem>>, %arg3: memref<512x512xbf16, #tpu.memory_space<vmem>>, %arg4: memref<1x512xf32, #tpu.memory_space<vmem>>, %arg5: memref<8x512xf32, #tpu.memory_space<vmem>>) attributes {dimension_semantics = [#tpu.dimension_semantics<parallel>, #tpu.dimension_semantics<parallel>], iteration_bounds = array<i64: 2, 1>, scalar_prefetch = 0 : i64, scratch_operands = 0 : i64, tpu.core_type = #tpu.core_type<tc>, window_params = [{transform_indices = @transform_0, window_bounds = array<i64: 8, 512>}, {transform_indices = @transform_1, window_bounds = array<i64: 512, 512>}, {transform_indices = @transform_2, window_bounds = array<i64: 1, 512>}, {transform_indices = @transform_3, window_bounds = array<i64: 8, 512>}]} {
    %c0 = arith.constant 0 : index
    %c0_0 = arith.constant 0 : index
    %0 = vector.load %arg2[%c0, %c0_0] : memref<8x512xf32, #tpu.memory_space<vmem>>, vector<8x512xf32>
    %1 = arith.truncf %0 : vector<8x512xf32> to vector<8x512xbf16>
    %c0_1 = arith.constant 0 : index
    %c0_2 = arith.constant 0 : index
    %2 = vector.load %arg3[%c0_1, %c0_2] : memref<512x512xbf16, #tpu.memory_space<vmem>>, vector<512x512xbf16>
    %cst = arith.constant dense<0.000000e+00> : vector<8x512xf32>
    %3 = tpu.matmul %1, %2, %cst {dimension_numbers = #tpu.dot_dimension_numbers<[1], [0], [0], [1], [0, 0, 1, 1], [], []>} : vector<8x512xbf16>, vector<512x512xbf16>, vector<8x512xf32> -> vector<8x512xf32>
    %c0_3 = arith.constant 0 : index
    %c0_4 = arith.constant 0 : index
    %4 = vector.load %arg4[%c0_3, %c0_4] : memref<1x512xf32, #tpu.memory_space<vmem>>, vector<1x512xf32>
    %5 = vector.broadcast %4 : vector<1x512xf32> to vector<8x512xf32>
    %6 = arith.addf %3, %5 : vector<8x512xf32>
    %c0_5 = arith.constant 0 : index
    %c0_6 = arith.constant 0 : index
    %7 = vector.load %arg5[%c0_5, %c0_6] : memref<8x512xf32, #tpu.memory_space<vmem>>, vector<8x512xf32>
    tpu.vector_store %arg5[%c0_5, %c0_6], %6 {strides = array<i32>} : memref<8x512xf32, #tpu.memory_space<vmem>>, vector<8x512xf32>,
    return
  }
  func.func @transform_0(%arg0: i32, %arg1: i32) -> (i32, i32) {
    %c0_i32 = arith.constant 0 : i32
    %c0_i32_0 = arith.constant 0 : i32
    return %arg1, %c0_i32 : i32, i32
  }
  func.func @transform_1(%arg0: i32, %arg1: i32) -> (i32, i32) {
    %c0_i32 = arith.constant 0 : i32
    %c0_i32_0 = arith.constant 0 : i32
    return %c0_i32, %arg0 : i32, i32
  }
  func.func @transform_2(%arg0: i32, %arg1: i32) -> (i32, i32) {
    %c0_i32 = arith.constant 0 : i32
    %c0_i32_0 = arith.constant 0 : i32
    return %c0_i32, %arg0 : i32, i32
  }
  func.func @transform_3(%arg0: i32, %arg1: i32) -> (i32, i32) {
    %c0_i32 = arith.constant 0 : i32
    return %arg1, %arg0 : i32, i32
  }
}

</mosaic_0001>

<bundles_post_ra>
// kernel: clip_text_projector.1
= control target key start
LH: loop header
LB: loop body
LE: loop exit
PB: predicated region body
PF: predicated region fallthrough
CT: control target
= control target key end

     0   :  { %8 = vsyncpa [#allocation3], 0  ;;  %s2807_s0 = inlined_call_operand.hbm [shape: f32[8,512], index: 0, kind: input, shape index: {}]   ;;  %s2808_s1 = inlined_call_operand.hbm [shape: bf16[512,1024], index: 1, kind: input, shape index: {}]   ;;  %s2809_s2 = inlined_call_operand.hbm [shape: f32[1,1024], index: 2, kind: input, shape index: {}]   ;;  %s2810_s3 = inlined_call_operand.hbm [shape: f32[8,1024], index: 3, kind: output, shape index: {}]  }
   0x1   :  { %9 = vsyncpa [#allocation6], 0 }
   0x2   :  { %11 = vsyncpa [#allocation6 + $0x1], 0 }
   0x3   :  { %12 = vsyncpa [#allocation4], 0 }
   0x4   :  { %14 = vsyncpa [#allocation4 + $0x1], 0  ;;  %s2344_s12 = smov 0   ;;  %s2346_s13 = smov 0  }
   0x5   :  { %s2348_s14 = smov 0   ;;  %s2350_s15 = smov 0  }
   0x6   :  { %s2352_s16 = smov 0   ;;  %s2354_s17 = smov 0  }
   0x7 LB: > { %s32_s18 = sadd.s32 1, %s2314_s16  ;;  %s65_s19 = sadd.s32 1, %s2306_s14  ;;  %s2318_s17 = sphi %s2354_s17, %s20_s17   ;;  %s2314_s16 = sphi %s2352_s16, %s2821_s16   ;;  %s2310_s15 = sphi %s2350_s15, %s2820_s15   ;;  %s2306_s14 = sphi %s2348_s14, %s2819_s14   ;;  %s2302_s13 = sphi %s2346_s13, %s2818_s13   ;;  %s2298_s12 = sphi %s2344_s12, %s2817_s12  }
   0x8   : > { %p34_p0 = scmp.ge.s32.totalorder %s32_s18, 2  ;;  %p72_p1 = scmp.ne.s32.totalorder %s2306_s14, %s2302_s13 }
   0x9   : > { %p73_p2 = scmp.eq.s32.totalorder %s2318_s17, 0  ;;  %p1403_p3 = scmp.ge.s32.totalorder %s2318_s17, 2 }
   0xa   : > { %s2823_s18 = smov (%p34_p0, %s32_s18), 0  ;;  %p2087_p5 = scmp.lt.s32.totalorder %s2318_s17, 2 }
   0xb   : > { %p2385_p4 = por %p73_p2, %p72_p1  ;;  %s62_s21 = ssub.s32 %s2314_s16, %s2823_s18 }
   0xc   : > { %s171_s22 = sand.u32 1, %s2318_s17   ;;  %p63_p6 = scmp.eq.s32.totalorder %s62_s21, 0 }
   0xd   : > { %s173_s23 = sand.u32 1, %s2306_s14   ;;  %s1931_s24 = sshll.u32 %s2314_s16, 4 }
   0xe   : > { %s2396_s25 = scalar_select %p63_p6, %s2306_s14, %s65_s19  }
   0xf   : > { %s1404_s26 = sshll.u32 %s173_s23, 10  ;;  %s180_s29 = scalar_lea.hbm %s2808_s1, %s1931_s24 }
  0x10   : > { %s181_s30 = sshll.u32 %s180_s29, 4  ;;  %s175_s4 = scalar_lea.vmem [#allocation5], %s1404_s26  ;;  %s182_s30 = int_to_ptr.hbm [resolvable:$true] %s181_s30 }
  0x11   : > { %s183_s5 = sshll.u32 %s175_s4, 4  ;;  %p2407_p7 = pnand %p2087_p5, %p2385_p4  ;;  %s184_s5 = int_to_ptr.vmem [resolvable:$true] %s183_s5 }
  0x12   : > { %s2411_s7 = scalar_lea.sflag [#allocation6], %s171_s22  ;;  %s2320_s8 = smov 512  }
  0x13   : > { %s2321_s9 = smov 256   ;;  %s2322_s10 = smov 16  }
  0x14   : > { %2078 = dma.hbm_to_vmem [thread:$0]  (!%p2407_p7), %s182_s30, 16384, %s184_s5, %s2411_s7, %s2320_s8, %s2321_s9, %s2322_s10  }
  0x15   : > { %s2417_s11 = sadd.s32 4294967295, %s2318_s17   ;;  %s1400_s19 = sadd.s32 4294967294, %s2318_s17  }
  0x16   : > { %p78_p8 = scmp.ne.s32.totalorder %s2302_s13, %s2298_s12  ;;  %p79_p9 = scmp.eq.s32.totalorder %s2417_s11, 0 }
  0x17   : > { %p130_p10 = scmp.eq.s32.totalorder %s2417_s11, 1  ;;  %p136_p11 = scmp.eq.s32.totalorder %s1400_s19, 1 }
  0x18   : > { %p2426_p12 = por %p79_p9, %p78_p8  ;;  %p1401_p13 = scmp.ge.s32.totalorder %s2318_s17, 1 }
  0x19   : > { %p2434_p0 = por %p130_p10, %p72_p1  ;;  %p2438_p2 = por %p136_p11, %p78_p8 }
  0x1a   : > { %p143_p4 = scmp.lt.s32.totalorder %s2318_s17, 3  ;;  %s158_s27 = sshll.u32 %s2807_s0, 4  ;;  %s159_s27 = int_to_ptr.hbm [resolvable:$true] %s158_s27 }
  0x1b   : > { %s2323_s29 = smov [#allocation2]   ;;  %s1407_s4 = sshll.u32 %s173_s23, 2 }
  0x1c   : > { %p2446_p5 = pnand %p1401_p13, %p143_p4  ;;  %s160_s30 = sshll.u32 %s2323_s29, 4  ;;  %s161_s30 = int_to_ptr.vmem [resolvable:$true] %s160_s30 }
  0x1d   : > { %s1408_s5 = sshll.u32 %s2314_s16, 2  ;;  %s197_s24 = scalar_lea.vmem [#allocation7], %s1407_s4 }
  0x1e   : > { %p2071_p1 = pneg %p2446_p5  ;;  %s201_s10 = scalar_lea.hbm %s2809_s2, %s1408_s5 }
  0x1f   : > { %s203_s19 = sshll.u32 %s201_s10, 4  ;;  %s205_s26 = sshll.u32 %s197_s24, 4  ;;  %s204_s19 = int_to_ptr.hbm [resolvable:$true] %s203_s19  ;;  %s206_s26 = int_to_ptr.vmem [resolvable:$true] %s205_s26 }
  0x20   : > { %p2072_p6 = pnand %p2071_p1, %p79_p9  ;;  %214 = sbr.rel (%p2446_p5) target bundleno = 315 (0x13b), region = 32 }
  0x21   : > { %2081 = dma.hbm_to_vmem [thread:$0]  (!%p2407_p7), %s204_s19, 64, %s206_s26, %s2411_s7  }
  0x22   : > { %2074 = dma.hbm_to_vmem [thread:$0]  (!%p2072_p6), %s159_s27, 512, %s161_s30, [#allocation3]  }
  0x25   : > { %2285 = dma.done.wait (%p79_p9), [#allocation3], 512  }
  0x26   : > { %2287 = vsyncadd (%p79_p9), [#allocation3], 4294966784  ;;  %s221_s23 = sand.u32 1, %s2417_s11   ;;  %s2471_s29 = sand.u32 1, %s2302_s13  }
  0x27   : > { %s1411_s27 = sshll.u32 %s2471_s29, 10  ;;  %s222_s30 = scalar_lea.sflag [#allocation6], %s221_s23 }
  0x28   : > { %s2474_s6 = scalar_lea.vmem [#allocation5], %s1411_s27 }
  0x29   : > { %2289 = dma.done.wait (%p2426_p12), %s222_s30, 16448  }
  0x2a   : > { %2291 = vsyncadd (%p2426_p12), %s222_s30, 4294950848  ;;  %v1528_v0 = vld [vmem:[%s2474_s6 + $0xe0] sm:$0xf]  ;;  %v1962_v1 = vld [vmem:[%s2474_s6 + $0xec] sm:$0xf0]  ;;  %s1412_s7 = sshll.u32 %s2471_s29, 2 }
  0x2b   : > { %v1656_v2 = vld [vmem:[%s2474_s6 + $0x1e0] sm:$0xf]  ;;  %v1529_v3 = vor.u32 %v1962_v1, %v1528_v0  ;;  %v1994_v4 = vld [vmem:[%s2474_s6 + $0x1ec] sm:$0xf0]  ;;  %s235_s11 = scalar_lea.vmem [#allocation7], %s1412_s7  ;;  %s1413_s20 = sshll.u32 %s2471_s29, 5 }
  0x2c   : > { %v1784_v5 = vld [vmem:[%s2474_s6 + $0x2e0] sm:$0xf]  ;;  %v2026_v6 = vld [vmem:[%s2474_s6 + $0x2ec] sm:$0xf0]  ;;  %v1657_v7 = vor.u32 %v1994_v4, %v1656_v2  ;;  %s2762_s28 = scalar_lea.vmem [#allocation8], %s1413_s20  ;;  %s2060_s4 = sshll.u32 %s2310_s15, 5 }
  0x2d   : > { %v1785_v8 = vor.u32 %v2026_v6, %v1784_v5  ;;  %v1912_v9 = vld [vmem:[%s2474_s6 + $0x3e0] sm:$0xf]  ;;  %v2058_v10 = vld [vmem:[%s2474_s6 + $0x3ec] sm:$0xf0]  ;;  %1053 = vmatpush.bf16.msra.mxu0 %v1529_v3  ;;  %s1279_s9 = scalar_lea.hbm %s2810_s3, %s2060_s4  ;;  %s1281_s10 = sshll.u32 %s2762_s28, 4  ;;  %s1282_s10 = int_to_ptr.vmem [resolvable:$true] %s1281_s10 }
  0x2e   : > { %v1512_v11 = vld [vmem:[%s2474_s6 + $0xc0] sm:$0xf]  ;;  %v1913_v12 = vor.u32 %v2058_v10, %v1912_v9  ;;  %v1958_v13 = vld [vmem:[%s2474_s6 + $0xcc] sm:$0xf0]  ;;  %1066 = vmatpush.bf16.msra.mxu1 %v1657_v7  ;;  %s1283_s19 = sshll.u32 %s1279_s9, 4  ;;  %s1266_s24 = scalar_lea.sflag [#allocation4], %s2471_s29  ;;  %s1284_s19 = int_to_ptr.hbm [resolvable:$true] %s1283_s19 }
  0x2f   : > { %v1640_v14 = vld [vmem:[%s2474_s6 + $0x1c0] sm:$0xf]  ;;  %v1990_v15 = vld [vmem:[%s2474_s6 + $0x1cc] sm:$0xf0]  ;;  %1079 = vmatpush.bf16.msra.mxu2 %v1785_v8  ;;  %v1513_v16 = vor.u32 %v1958_v13, %v1512_v11  ;;  %s2246_s26 = sshra.s32 %s1284_s19, 4  ;;  %s2252_s30 = scalar_lea.hbm %s2810_s3, 64  ;;  %s2247_s26 = int_to_ptr.hbm [resolvable:$true] %s2246_s26 }
  0x30   : > { %v1641_v17 = vor.u32 %v1990_v15, %v1640_v14  ;;  %v1768_v18 = vld [vmem:[%s2474_s6 + $0x2c0] sm:$0xf]  ;;  %v2022_v19 = vld [vmem:[%s2474_s6 + $0x2cc] sm:$0xf0]  ;;  %1092 = vmatpush.bf16.msra.mxu3 %v1913_v12  ;;  %s2248_s15 = scalar_lea.hbm %s2247_s26, 32  ;;  %p2253_p10 = scmp.lt.s32.totalorder %s2247_s26, %s2810_s3 }
  0x31   : > { %v1896_v20 = vld [vmem:[%s2474_s6 + $0x3c0] sm:$0xf]  ;;  %v1769_v21 = vor.u32 %v2022_v19, %v1768_v18  ;;  %v2054_v22 = vld [vmem:[%s2474_s6 + $0x3cc] sm:$0xf0]  ;;  %1054 = vmatpush.bf16.msra.mxu0 %v1513_v16  ;;  %p2249_p7 = scmp.ne.s32.totalorder %s2247_s26, %s2248_s15  ;;  %p2254_p11 = scmp.lt.s32.totalorder %s2252_s30, %s2248_s15 }
  0x32   : > { %v1496_v23 = vld [vmem:[%s2474_s6 + $0xa0] sm:$0xf]  ;;  %v1954_v24 = vld [vmem:[%s2474_s6 + $0xac] sm:$0xf0]  ;;  %v1897_v25 = vor.u32 %v2054_v22, %v1896_v20  ;;  %1067 = vmatpush.bf16.msra.mxu1 %v1641_v17 }
  0x33   : > { %v1624_v26 = vld [vmem:[%s2474_s6 + $0x1a0] sm:$0xf]  ;;  %v1986_v27 = vld [vmem:[%s2474_s6 + $0x1ac] sm:$0xf0]  ;;  %v1497_v29 = vor.u32 %v1954_v24, %v1496_v23  ;;  %1080 = vmatpush.bf16.msra.mxu2 %v1769_v21  ;;  %p2250_p8 = pnand %p2249_p7, %p2434_p0  ;;  %p2255_p12 = por %p2254_p11, %p2253_p10 }
  0x34   : > { %v1752_v28 = vld [vmem:[%s2474_s6 + $0x2a0] sm:$0xf]  ;;  %v2018_v30 = vld [vmem:[%s2474_s6 + $0x2ac] sm:$0xf0]  ;;  %v1625_v33 = vor.u32 %v1986_v27, %v1624_v26  ;;  %1093 = vmatpush.bf16.msra.mxu3 %v1897_v25 }
  0x35   : > { %v1880_v31 = vld [vmem:[%s2474_s6 + $0x3a0] sm:$0xf]  ;;  %v2050_v32 = vld [vmem:[%s2474_s6 + $0x3ac] sm:$0xf0]  ;;  %v1753_v34 = vor.u32 %v2018_v30, %v1752_v28  ;;  %1055 = vmatpush.bf16.msra.mxu0 %v1497_v29  ;;  %v1960_v28 = vld [vmem:[%s2474_s6 + $0xe4] sm:$0xf]  ;;  %p2251_p9 = pneg %p2250_p8 }
  0x36   : > { %v1480_v35 = vld [vmem:[%s2474_s6 + $0x80] sm:$0xf]  ;;  %v1950_v36 = vld [vmem:[%s2474_s6 + $0x8c] sm:$0xf0]  ;;  %v1881_v38 = vor.u32 %v2050_v32, %v1880_v31  ;;  %1068 = vmatpush.bf16.msra.mxu1 %v1625_v33  ;;  %v1530_v29 = vld [vmem:[%s2474_s6 + $0xf0] sm:$0xf0] }
  0x37   : > { %v1608_v37 = vld [vmem:[%s2474_s6 + $0x180] sm:$0xf]  ;;  %v1982_v39 = vld [vmem:[%s2474_s6 + $0x18c] sm:$0xf0]  ;;  %v1481_v44 = vor.u32 %v1950_v36, %v1480_v35  ;;  %1081 = vmatpush.bf16.msra.mxu2 %v1753_v34  ;;  %v1992_v30 = vld [vmem:[%s2474_s6 + $0x1e4] sm:$0xf]  ;;  %p2256_p13 = pnand %p2255_p12, %p2251_p9 }
  0x38   : > { %v1736_v40 = vld [vmem:[%s2474_s6 + $0x280] sm:$0xf]  ;;  %v2014_v41 = vld [vmem:[%s2474_s6 + $0x28c] sm:$0xf0]  ;;  %v1609_v45 = vor.u32 %v1982_v39, %v1608_v37  ;;  %1094 = vmatpush.bf16.msra.mxu3 %v1881_v38  ;;  %v1658_v32 = vld [vmem:[%s2474_s6 + $0x1f0] sm:$0xf0] }
  0x39   : > { %v1864_v42 = vld [vmem:[%s2474_s6 + $0x380] sm:$0xf]  ;;  %v2046_v43 = vld [vmem:[%s2474_s6 + $0x38c] sm:$0xf0]  ;;  %v1737_v46 = vor.u32 %v2014_v41, %v1736_v40  ;;  %1056 = vmatpush.bf16.msra.mxu0 %v1481_v44  ;;  %v2024_v33 = vld [vmem:[%s2474_s6 + $0x2e4] sm:$0xf]  ;;  %v1533_v40 = vor.u32 %v1960_v28, %v1530_v29  ;;  %v1661_v41 = vor.u32 %v1992_v30, %v1658_v32 }
  0x3a   : > { %v1464_v47 = vld [vmem:[%s2474_s6 + $0x60] sm:$0xf]  ;;  %v1946_v48 = vld [vmem:[%s2474_s6 + $0x6c] sm:$0xf0]  ;;  %v1865_v50 = vor.u32 %v2046_v43, %v1864_v42  ;;  %1069 = vmatpush.bf16.msra.mxu1 %v1609_v45  ;;  %v1786_v34 = vld [vmem:[%s2474_s6 + $0x2f0] sm:$0xf0] }
  0x3b   : > { %v1592_v49 = vld [vmem:[%s2474_s6 + $0x160] sm:$0xf]  ;;  %v1978_v51 = vld [vmem:[%s2474_s6 + $0x16c] sm:$0xf0]  ;;  %v1465_v56 = vor.u32 %v1946_v48, %v1464_v47  ;;  %1082 = vmatpush.bf16.msra.mxu2 %v1737_v46  ;;  %v2056_v37 = vld [vmem:[%s2474_s6 + $0x3e4] sm:$0xf]  ;;  %v1789_v42 = vor.u32 %v2024_v33, %v1786_v34 }
  0x3c   : > { %v1720_v52 = vld [vmem:[%s2474_s6 + $0x260] sm:$0xf]  ;;  %v2010_v53 = vld [vmem:[%s2474_s6 + $0x26c] sm:$0xf0]  ;;  %v1593_v57 = vor.u32 %v1978_v51, %v1592_v49  ;;  %1095 = vmatpush.bf16.msra.mxu3 %v1865_v50  ;;  %v1914_v38 = vld [vmem:[%s2474_s6 + $0x3f0] sm:$0xf0] }
  0x3d   : > { %v1848_v54 = vld [vmem:[%s2474_s6 + $0x360] sm:$0xf]  ;;  %v2042_v55 = vld [vmem:[%s2474_s6 + $0x36c] sm:$0xf0]  ;;  %v1721_v58 = vor.u32 %v2010_v53, %v1720_v52  ;;  %1057 = vmatpush.bf16.msra.mxu0 %v1465_v56  ;;  %v1956_v43 = vld [vmem:[%s2474_s6 + $0xc4] sm:$0xf]  ;;  %v1917_v46 = vor.u32 %v2056_v37, %v1914_v38 }
  0x3e   : > { %v1448_v59 = vld [vmem:[%s2474_s6 + $0x40] sm:$0xf]  ;;  %v1942_v60 = vld [vmem:[%s2474_s6 + $0x4c] sm:$0xf0]  ;;  %v1849_v62 = vor.u32 %v2042_v55, %v1848_v54  ;;  %1070 = vmatpush.bf16.msra.mxu1 %v1593_v57  ;;  %v1514_v44 = vld [vmem:[%s2474_s6 + $0xd0] sm:$0xf0] }
  0x3f   : > { %v1576_v61 = vld [vmem:[%s2474_s6 + $0x140] sm:$0xf]  ;;  %v1974_v63 = vld [vmem:[%s2474_s6 + $0x14c] sm:$0xf0]  ;;  %v1449_v4 = vor.u32 %v1942_v60, %v1448_v59  ;;  %1083 = vmatpush.bf16.msra.mxu2 %v1721_v58  ;;  %v1988_v45 = vld [vmem:[%s2474_s6 + $0x1c4] sm:$0xf]  ;;  %v1517_v52 = vor.u32 %v1956_v43, %v1514_v44 }
  0x40   : > { %v1704_v0 = vld [vmem:[%s2474_s6 + $0x240] sm:$0xf]  ;;  %v2006_v1 = vld [vmem:[%s2474_s6 + $0x24c] sm:$0xf0]  ;;  %v1577_v5 = vor.u32 %v1974_v63, %v1576_v61  ;;  %1096 = vmatpush.bf16.msra.mxu3 %v1849_v62  ;;  %v1642_v47 = vld [vmem:[%s2474_s6 + $0x1d0] sm:$0xf0] }
  0x41   : > { %v1832_v2 = vld [vmem:[%s2474_s6 + $0x340] sm:$0xf]  ;;  %v2038_v3 = vld [vmem:[%s2474_s6 + $0x34c] sm:$0xf0]  ;;  %v1705_v6 = vor.u32 %v2006_v1, %v1704_v0  ;;  %1058 = vmatpush.bf16.msra.mxu0 %v1449_v4  ;;  %v2020_v48 = vld [vmem:[%s2474_s6 + $0x2c4] sm:$0xf]  ;;  %v1645_v54 = vor.u32 %v1988_v45, %v1642_v47 }
  0x42   : > { %v1432_v7 = vld [vmem:[%s2474_s6 + $0x20] sm:$0xf]  ;;  %v1938_v8 = vld [vmem:[%s2474_s6 + $0x2c] sm:$0xf0]  ;;  %v1833_v10 = vor.u32 %v2038_v3, %v1832_v2  ;;  %1071 = vmatpush.bf16.msra.mxu1 %v1577_v5  ;;  %v1770_v49 = vld [vmem:[%s2474_s6 + $0x2d0] sm:$0xf0] }
  0x43   : > { %v1560_v9 = vld [vmem:[%s2474_s6 + $0x120] sm:$0xf]  ;;  %v1970_v11 = vld [vmem:[%s2474_s6 + $0x12c] sm:$0xf0]  ;;  %v1433_v16 = vor.u32 %v1938_v8, %v1432_v7  ;;  %1084 = vmatpush.bf16.msra.mxu2 %v1705_v6  ;;  %v2052_v50 = vld [vmem:[%s2474_s6 + $0x3c4] sm:$0xf]  ;;  %v1773_v55 = vor.u32 %v2020_v48, %v1770_v49 }
  0x44   : > { %v1688_v12 = vld [vmem:[%s2474_s6 + $0x220] sm:$0xf]  ;;  %v2002_v13 = vld [vmem:[%s2474_s6 + $0x22c] sm:$0xf0]  ;;  %v1561_v19 = vor.u32 %v1970_v11, %v1560_v9  ;;  %1097 = vmatpush.bf16.msra.mxu3 %v1833_v10  ;;  %v1898_v51 = vld [vmem:[%s2474_s6 + $0x3d0] sm:$0xf0] }
  0x45   : > { %v1816_v14 = vld [vmem:[%s2474_s6 + $0x320] sm:$0xf]  ;;  %v2034_v15 = vld [vmem:[%s2474_s6 + $0x32c] sm:$0xf0]  ;;  %v1689_v20 = vor.u32 %v2002_v13, %v1688_v12  ;;  %1059 = vmatpush.bf16.msra.mxu0 %v1433_v16  ;;  %v1952_v53 = vld [vmem:[%s2474_s6 + $0xa4] sm:$0xf]  ;;  %v1901_v59 = vor.u32 %v2052_v50, %v1898_v51 }
  0x46   : > { %v1416_v17 = vld [vmem:[%s2474_s6] sm:$0xf]  ;;  %v1934_v18 = vld [vmem:[%s2474_s6 + $0xc] sm:$0xf0]  ;;  %v1817_v24 = vor.u32 %v2034_v15, %v1816_v14  ;;  %1072 = vmatpush.bf16.msra.mxu1 %v1561_v19  ;;  %v1498_v56 = vld [vmem:[%s2474_s6 + $0xb0] sm:$0xf0] }
  0x47   : > { %v1544_v21 = vld [vmem:[%s2474_s6 + $0x100] sm:$0xf]  ;;  %v1966_v22 = vld [vmem:[%s2474_s6 + $0x10c] sm:$0xf0]  ;;  %v1417_v31 = vor.u32 %v1934_v18, %v1416_v17  ;;  %1085 = vmatpush.bf16.msra.mxu2 %v1689_v20  ;;  %v1984_v57 = vld [vmem:[%s2474_s6 + $0x1a4] sm:$0xf]  ;;  %v1501_v0 = vor.u32 %v1952_v53, %v1498_v56 }
  0x48   : > { %v1672_v23 = vld [vmem:[%s2474_s6 + $0x200] sm:$0xf]  ;;  %v1998_v25 = vld [vmem:[%s2474_s6 + $0x20c] sm:$0xf0]  ;;  %v1545_v35 = vor.u32 %v1966_v22, %v1544_v21  ;;  %1098 = vmatpush.bf16.msra.mxu3 %v1817_v24  ;;  %v1626_v58 = vld [vmem:[%s2474_s6 + $0x1b0] sm:$0xf0] }
  0x49   : > { %v1800_v26 = vld [vmem:[%s2474_s6 + $0x300] sm:$0xf]  ;;  %v2030_v27 = vld [vmem:[%s2474_s6 + $0x30c] sm:$0xf0]  ;;  %v1673_v36 = vor.u32 %v1998_v25, %v1672_v23  ;;  %1060 = vmatpush.bf16.msra.mxu0 %v1417_v31  ;;  %v2016_v60 = vld [vmem:[%s2474_s6 + $0x2a4] sm:$0xf]  ;;  %v1629_v1 = vor.u32 %v1984_v57, %v1626_v58 }
  0x4a   : > { %v1801_v39 = vor.u32 %v2030_v27, %v1800_v26  ;;  %1073 = vmatpush.bf16.msra.mxu1 %v1545_v35  ;;  %v1754_v61 = vld [vmem:[%s2474_s6 + $0x2b0] sm:$0xf0]  ;;  %v2048_v62 = vld [vmem:[%s2474_s6 + $0x3a4] sm:$0xf]  ;;  %v270_v3 = vld [vmem:[#allocation2 + $0x18] sm:$0xff] }
  0x4b   : > { %1086 = vmatpush.bf16.msra.mxu2 %v1673_v36  ;;  %v1882_v63 = vld [vmem:[%s2474_s6 + $0x3b0] sm:$0xf0]  ;;  %v1757_v4 = vor.u32 %v2016_v60, %v1754_v61  ;;  %v1948_v5 = vld [vmem:[%s2474_s6 + $0x84] sm:$0xf]  ;;  %v2573_v9 = vpack.c.bf16 %v270_v3, %v270_v3  ;;  %v268_v19 = vld [vmem:[#allocation2 + $0x8] sm:$0xff] }
  0x4c   : > { %1099 = vmatpush.bf16.msra.mxu3 %v1801_v39  ;;  %v269_v2 = vld [vmem:[#allocation2 + $0x10] sm:$0xff]  ;;  %v1980_v7 = vld [vmem:[%s2474_s6 + $0x184] sm:$0xf]  ;;  %v1885_v10 = vor.u32 %v2048_v62, %v1882_v63  ;;  %v2587_v25 = vpack.c.bf16 %v268_v19, %v268_v19 }
  0x4d   : > { %1105 = vmatpush.bf16.msrb.mxu0 %v1533_v40  ;;  %v1482_v6 = vld [vmem:[%s2474_s6 + $0x90] sm:$0xf0]  ;;  %v2571_v8 = vpack.c.bf16 %v269_v2, %v269_v2  ;;  %v2012_v12 = vld [vmem:[%s2474_s6 + $0x284] sm:$0xf] }
  0x4e   : > { %1118 = vmatpush.bf16.msrb.mxu1 %v1661_v41  ;;  %v1610_v11 = vld [vmem:[%s2474_s6 + $0x190] sm:$0xf0]  ;;  %v2044_v14 = vld [vmem:[%s2474_s6 + $0x384] sm:$0xf]  ;;  %v1485_v17 = vor.u32 %v1948_v5, %v1482_v6  ;;  %v1963_v5 = vld [vmem:[%s2474_s6 + $0xf4] sm:$0xf0] }
  0x4f   : > { %1131 = vmatpush.bf16.msrb.mxu2 %v1789_v42  ;;  %v1738_v13 = vld [vmem:[%s2474_s6 + $0x290] sm:$0xf0]  ;;  %1100 = vmatmul.bf16.vlgmr.msra.gmra.mxu3 %v2573_v9  ;;  %v267_v16 = vld [vmem:[#allocation2] sm:$0xff]  ;;  %v1613_v20 = vor.u32 %v1980_v7, %v1610_v11  ;;  %v1664_v6 = vld [vmem:[%s2474_s6 + $0x1e8] sm:$0xf] }
  0x50   : > { %1144 = vmatpush.bf16.msrb.mxu3 %v1917_v46  ;;  %v1866_v15 = vld [vmem:[%s2474_s6 + $0x390] sm:$0xf0]  ;;  %1087 = vmatmul.bf16.vlgmr.msra.gmra.mxu2 %v2571_v8  ;;  %v2582_v18 = vpack.c.bf16 %v267_v16, %v267_v16  ;;  %v1741_v21 = vor.u32 %v2012_v12, %v1738_v13  ;;  %v1944_v22 = vld [vmem:[%s2474_s6 + $0x64] sm:$0xf]  ;;  %v1792_v11 = vld [vmem:[%s2474_s6 + $0x2e8] sm:$0xf] }
  0x51   : > { %1106 = vmatpush.bf16.msrb.mxu0 %v1517_v52  ;;  %v1466_v23 = vld [vmem:[%s2474_s6 + $0x70] sm:$0xf0]  ;;  %v1976_v24 = vld [vmem:[%s2474_s6 + $0x164] sm:$0xf]  ;;  %v1869_v26 = vor.u32 %v2044_v14, %v1866_v15  ;;  %1074 = vmatmul.bf16.vlgmr.msra.gmra.mxu1 %v2587_v25  ;;  %v2027_v12 = vld [vmem:[%s2474_s6 + $0x2f4] sm:$0xf0] }
  0x52   : > { %1119 = vmatpush.bf16.msrb.mxu1 %v1645_v54  ;;  %v1594_v27 = vld [vmem:[%s2474_s6 + $0x170] sm:$0xf0]  ;;  %v2008_v28 = vld [vmem:[%s2474_s6 + $0x264] sm:$0xf]  ;;  %1061 = vmatmul.bf16.vlgmr.msra.gmra.mxu0 %v2582_v18  ;;  %v1469_v32 = vor.u32 %v1944_v22, %v1466_v23  ;;  %v1920_v15 = vld [vmem:[%s2474_s6 + $0x3e8] sm:$0xf] }
  0x53   : > { %1132 = vmatpush.bf16.msrb.mxu2 %v1773_v55  ;;  %v1722_v29 = vld [vmem:[%s2474_s6 + $0x270] sm:$0xf0]  ;;  %v2040_v30 = vld [vmem:[%s2474_s6 + $0x364] sm:$0xf]  ;;  %v1597_v33 = vor.u32 %v1976_v24, %v1594_v27  ;;  %v2059_v16 = vld [vmem:[%s2474_s6 + $0x3f4] sm:$0xf0] }
  0x54   : > { %1145 = vmatpush.bf16.msrb.mxu3 %v1901_v59  ;;  %v1850_v31 = vld [vmem:[%s2474_s6 + $0x370] sm:$0xf0]  ;;  %v1725_v34 = vor.u32 %v2008_v28, %v1722_v29  ;;  %v1940_v35 = vld [vmem:[%s2474_s6 + $0x44] sm:$0xf]  ;;  %v1520_v22 = vld [vmem:[%s2474_s6 + $0xc8] sm:$0xf] }
  0x55   : > { %1107 = vmatpush.bf16.msrb.mxu0 %v1501_v0  ;;  %v1450_v36 = vld [vmem:[%s2474_s6 + $0x50] sm:$0xf0]  ;;  %v1972_v37 = vld [vmem:[%s2474_s6 + $0x144] sm:$0xf]  ;;  %v1853_v38 = vor.u32 %v2040_v30, %v1850_v31  ;;  %v1959_v23 = vld [vmem:[%s2474_s6 + $0xd4] sm:$0xf0] }
  0x56   : > { %1120 = vmatpush.bf16.msrb.mxu1 %v1629_v1  ;;  %v1578_v39 = vld [vmem:[%s2474_s6 + $0x150] sm:$0xf0]  ;;  %v2004_v40 = vld [vmem:[%s2474_s6 + $0x244] sm:$0xf]  ;;  %v1453_v44 = vor.u32 %v1940_v35, %v1450_v36  ;;  %v1648_v24 = vld [vmem:[%s2474_s6 + $0x1c8] sm:$0xf] }
  0x57   : > { %1133 = vmatpush.bf16.msrb.mxu2 %v1757_v4  ;;  %v1706_v41 = vld [vmem:[%s2474_s6 + $0x250] sm:$0xf0]  ;;  %v2036_v42 = vld [vmem:[%s2474_s6 + $0x344] sm:$0xf]  ;;  %v1581_v45 = vor.u32 %v1972_v37, %v1578_v39  ;;  %v1536_v4 = vld [vmem:[%s2474_s6 + $0xe8] sm:$0xf] }
  0x58   : > { %1146 = vmatpush.bf16.msrb.mxu3 %v1885_v10  ;;  %v1834_v43 = vld [vmem:[%s2474_s6 + $0x350] sm:$0xf0]  ;;  %v1709_v46 = vor.u32 %v2004_v40, %v1706_v41  ;;  %v1936_v47 = vld [vmem:[%s2474_s6 + $0x24] sm:$0xf]  ;;  %v1995_v10 = vld [vmem:[%s2474_s6 + $0x1f4] sm:$0xf0]  ;;  %v1537_v19 = vor.u32 %v1963_v5, %v1536_v4 }
  0x59   : > { %1108 = vmatpush.bf16.msrb.mxu0 %v1485_v17  ;;  %v1434_v48 = vld [vmem:[%s2474_s6 + $0x30] sm:$0xf0]  ;;  %v1968_v49 = vld [vmem:[%s2474_s6 + $0x124] sm:$0xf]  ;;  %v1837_v50 = vor.u32 %v2036_v42, %v1834_v43  ;;  %v1991_v27 = vld [vmem:[%s2474_s6 + $0x1d4] sm:$0xf0] }
  0x5a   : > { %1121 = vmatpush.bf16.msrb.mxu1 %v1613_v20  ;;  %v1562_v51 = vld [vmem:[%s2474_s6 + $0x130] sm:$0xf0]  ;;  %v2000_v52 = vld [vmem:[%s2474_s6 + $0x224] sm:$0xf]  ;;  %v1437_v56 = vor.u32 %v1936_v47, %v1434_v48  ;;  %v1665_v20 = vor.u32 %v1995_v10, %v1664_v6  ;;  %v1776_v28 = vld [vmem:[%s2474_s6 + $0x2c8] sm:$0xf] }
  0x5b   : > { %1134 = vmatpush.bf16.msrb.mxu2 %v1741_v21  ;;  %v1690_v53 = vld [vmem:[%s2474_s6 + $0x230] sm:$0xf0]  ;;  %v2032_v54 = vld [vmem:[%s2474_s6 + $0x324] sm:$0xf]  ;;  %v1565_v59 = vor.u32 %v1968_v49, %v1562_v51  ;;  %v1793_v21 = vor.u32 %v2027_v12, %v1792_v11  ;;  %v2023_v29 = vld [vmem:[%s2474_s6 + $0x2d4] sm:$0xf0] }
  0x5c   : > { %1147 = vmatpush.bf16.msrb.mxu3 %v1869_v26  ;;  %v1818_v55 = vld [vmem:[%s2474_s6 + $0x330] sm:$0xf0]  ;;  %v1932_v57 = vld [vmem:[%s2474_s6 + $0x4] sm:$0xf]  ;;  %v1693_v60 = vor.u32 %v2000_v52, %v1690_v53  ;;  %v1921_v26 = vor.u32 %v2059_v16, %v1920_v15  ;;  %v1904_v30 = vld [vmem:[%s2474_s6 + $0x3c8] sm:$0xf] }
  0x5d   : > { %1109 = vmatpush.bf16.msrb.mxu0 %v1469_v32  ;;  %v1418_v58 = vld [vmem:[%s2474_s6 + $0x10] sm:$0xf0]  ;;  %v1964_v61 = vld [vmem:[%s2474_s6 + $0x104] sm:$0xf]  ;;  %v1821_v0 = vor.u32 %v2032_v54, %v1818_v55  ;;  %v2055_v31 = vld [vmem:[%s2474_s6 + $0x3d4] sm:$0xf0]  ;;  %v1521_v32 = vor.u32 %v1959_v23, %v1520_v22 }
  0x5e   : > { %1122 = vmatpush.bf16.msrb.mxu1 %v1597_v33  ;;  %v1546_v62 = vld [vmem:[%s2474_s6 + $0x110] sm:$0xf0]  ;;  %v1996_v63 = vld [vmem:[%s2474_s6 + $0x204] sm:$0xf]  ;;  %v1421_v7 = vor.u32 %v1932_v57, %v1418_v58  ;;  %v1649_v33 = vor.u32 %v1991_v27, %v1648_v24  ;;  %v1504_v35 = vld [vmem:[%s2474_s6 + $0xa8] sm:$0xf] }
  0x5f   : > { %1135 = vmatpush.bf16.msrb.mxu2 %v1725_v34  ;;  %v1674_v1 = vld [vmem:[%s2474_s6 + $0x210] sm:$0xf0]  ;;  %v2028_v2 = vld [vmem:[%s2474_s6 + $0x304] sm:$0xf]  ;;  %v1549_v13 = vor.u32 %v1964_v61, %v1546_v62  ;;  %v1777_v34 = vor.u32 %v2023_v29, %v1776_v28  ;;  %v1955_v36 = vld [vmem:[%s2474_s6 + $0xb4] sm:$0xf0] }
  0x60   : > { %1148 = vmatpush.bf16.msrb.mxu3 %v1853_v38  ;;  %v1802_v3 = vld [vmem:[%s2474_s6 + $0x310] sm:$0xf0]  ;;  %v1677_v14 = vor.u32 %v1996_v63, %v1674_v1  ;;  %v1632_v37 = vld [vmem:[%s2474_s6 + $0x1a8] sm:$0xf]  ;;  %v1905_v38 = vor.u32 %v2055_v31, %v1904_v30  ;;  %v1987_v39 = vld [vmem:[%s2474_s6 + $0x1b4] sm:$0xf0] }
  0x61   : > { %1110 = vmatpush.bf16.msrb.mxu0 %v1453_v44  ;;  %v1805_v17 = vor.u32 %v2028_v2, %v1802_v3  ;;  %v1760_v40 = vld [vmem:[%s2474_s6 + $0x2a8] sm:$0xf]  ;;  %v2019_v41 = vld [vmem:[%s2474_s6 + $0x2b4] sm:$0xf0]  ;;  %v1505_v44 = vor.u32 %v1955_v36, %v1504_v35 }
  0x62   : > { %1123 = vmatpush.bf16.msrb.mxu1 %v1581_v45  ;;  %v1888_v42 = vld [vmem:[%s2474_s6 + $0x3a8] sm:$0xf]  ;;  %v2051_v43 = vld [vmem:[%s2474_s6 + $0x3b4] sm:$0xf0]  ;;  %v1633_v45 = vor.u32 %v1987_v39, %v1632_v37 }
  0x63   : > { %1136 = vmatpush.bf16.msrb.mxu2 %v1709_v46  ;;  %v1761_v46 = vor.u32 %v2019_v41, %v1760_v40  ;;  %v1488_v47 = vld [vmem:[%s2474_s6 + $0x88] sm:$0xf]  ;;  %v1951_v48 = vld [vmem:[%s2474_s6 + $0x94] sm:$0xf0] }
  0x64   : > { %1149 = vmatpush.bf16.msrb.mxu3 %v1837_v50  ;;  %v1616_v49 = vld [vmem:[%s2474_s6 + $0x188] sm:$0xf]  ;;  %v1889_v50 = vor.u32 %v2051_v43, %v1888_v42  ;;  %v1983_v51 = vld [vmem:[%s2474_s6 + $0x194] sm:$0xf0] }
  0x65   : > { %1111 = vmatpush.bf16.msrb.mxu0 %v1437_v56  ;;  %v1744_v52 = vld [vmem:[%s2474_s6 + $0x288] sm:$0xf]  ;;  %v2015_v53 = vld [vmem:[%s2474_s6 + $0x294] sm:$0xf0]  ;;  %v1489_v56 = vor.u32 %v1951_v48, %v1488_v47  ;;  %v1617_v57 = vor.u32 %v1983_v51, %v1616_v49  ;;  %v1666_v48 = vld [vmem:[%s2474_s6 + $0x1f8] sm:$0xf0] }
  0x66   : > { %1124 = vmatpush.bf16.msrb.mxu1 %v1565_v59  ;;  %v1872_v54 = vld [vmem:[%s2474_s6 + $0x388] sm:$0xf]  ;;  %v2047_v55 = vld [vmem:[%s2474_s6 + $0x394] sm:$0xf0]  ;;  %v1745_v58 = vor.u32 %v2015_v53, %v1744_v52  ;;  %v2025_v49 = vld [vmem:[%s2474_s6 + $0x2ec] sm:$0xf] }
  0x67   : > { %1137 = vmatpush.bf16.msrb.mxu2 %v1693_v60  ;;  %v1472_v59 = vld [vmem:[%s2474_s6 + $0x68] sm:$0xf]  ;;  %v1947_v60 = vld [vmem:[%s2474_s6 + $0x74] sm:$0xf0]  ;;  %v1873_v62 = vor.u32 %v2047_v55, %v1872_v54  ;;  %v2057_v53 = vld [vmem:[%s2474_s6 + $0x3ec] sm:$0xf] }
  0x68   : > { %1150 = vmatpush.bf16.msrb.mxu3 %v1821_v0  ;;  %v1600_v61 = vld [vmem:[%s2474_s6 + $0x168] sm:$0xf]  ;;  %v1979_v63 = vld [vmem:[%s2474_s6 + $0x174] sm:$0xf0]  ;;  %v1473_v4 = vor.u32 %v1947_v60, %v1472_v59  ;;  %v1922_v54 = vld [vmem:[%s2474_s6 + $0x3f8] sm:$0xf0] }
  0x69   : > { %1112 = vmatpush.bf16.msrb.mxu0 %v1421_v7  ;;  %v1728_v0 = vld [vmem:[%s2474_s6 + $0x268] sm:$0xf]  ;;  %v2011_v1 = vld [vmem:[%s2474_s6 + $0x274] sm:$0xf0]  ;;  %v1601_v5 = vor.u32 %v1979_v63, %v1600_v61  ;;  %v1957_v59 = vld [vmem:[%s2474_s6 + $0xcc] sm:$0xf] }
  0x6a   : > { %1125 = vmatpush.bf16.msrb.mxu1 %v1549_v13  ;;  %v1856_v2 = vld [vmem:[%s2474_s6 + $0x368] sm:$0xf]  ;;  %v2043_v3 = vld [vmem:[%s2474_s6 + $0x374] sm:$0xf0]  ;;  %v1729_v6 = vor.u32 %v2011_v1, %v1728_v0  ;;  %v1522_v60 = vld [vmem:[%s2474_s6 + $0xd8] sm:$0xf0] }
  0x6b   : > { %1138 = vmatpush.bf16.msrb.mxu2 %v1677_v14  ;;  %v1456_v7 = vld [vmem:[%s2474_s6 + $0x48] sm:$0xf]  ;;  %v1943_v10 = vld [vmem:[%s2474_s6 + $0x54] sm:$0xf0]  ;;  %v1857_v12 = vor.u32 %v2043_v3, %v1856_v2  ;;  %v1989_v61 = vld [vmem:[%s2474_s6 + $0x1cc] sm:$0xf] }
  0x6c   : > { %1151 = vmatpush.bf16.msrb.mxu3 %v1805_v17  ;;  %1113 = vmatmul.bf16.vlgmr.msrb.gmra.mxu0 %v2582_v18  ;;  %v1584_v11 = vld [vmem:[%s2474_s6 + $0x148] sm:$0xf]  ;;  %v1975_v13 = vld [vmem:[%s2474_s6 + $0x154] sm:$0xf0]  ;;  %v1650_v63 = vld [vmem:[%s2474_s6 + $0x1d8] sm:$0xf0] }
  0x6d   : > { %1157 = vmatpush.bf16.msra.mxu0 %v1537_v19  ;;  %1126 = vmatmul.bf16.vlgmr.msrb.gmra.mxu1 %v2587_v25  ;;  %v1712_v14 = vld [vmem:[%s2474_s6 + $0x248] sm:$0xf]  ;;  %v2007_v15 = vld [vmem:[%s2474_s6 + $0x254] sm:$0xf0]  ;;  %v1457_v19 = vor.u32 %v1943_v10, %v1456_v7  ;;  %v2021_v0 = vld [vmem:[%s2474_s6 + $0x2cc] sm:$0xf] }
  0x6e   : > { %1170 = vmatpush.bf16.msra.mxu1 %v1665_v20  ;;  %1139 = vmatmul.bf16.vlgmr.msrb.gmra.mxu2 %v2571_v8  ;;  %v1840_v16 = vld [vmem:[%s2474_s6 + $0x348] sm:$0xf]  ;;  %v2039_v17 = vld [vmem:[%s2474_s6 + $0x354] sm:$0xf0]  ;;  %v1585_v20 = vor.u32 %v1975_v13, %v1584_v11  ;;  %v1778_v1 = vld [vmem:[%s2474_s6 + $0x2d8] sm:$0xf0] }
  0x6f   : > { %1183 = vmatpush.bf16.msra.mxu2 %v1793_v21  ;;  %1152 = vmatmul.bf16.vlgmr.msrb.gmra.mxu3 %v2573_v9  ;;  %v1713_v21 = vor.u32 %v2007_v15, %v1712_v14  ;;  %v1440_v22 = vld [vmem:[%s2474_s6 + $0x28] sm:$0xf]  ;;  %v1939_v23 = vld [vmem:[%s2474_s6 + $0x34] sm:$0xf0]  ;;  %v2053_v2 = vld [vmem:[%s2474_s6 + $0x3cc] sm:$0xf] }
  0x70   : > { %1196 = vmatpush.bf16.msra.mxu3 %v1921_v26  ;;  %v1568_v24 = vld [vmem:[%s2474_s6 + $0x128] sm:$0xf]  ;;  %v1841_v26 = vor.u32 %v2039_v17, %v1840_v16  ;;  %v1971_v27 = vld [vmem:[%s2474_s6 + $0x134] sm:$0xf0]  ;;  %v1906_v3 = vld [vmem:[%s2474_s6 + $0x3d8] sm:$0xf0] }
  0x71   : > { %1158 = vmatpush.bf16.msra.mxu0 %v1521_v32  ;;  %v1696_v28 = vld [vmem:[%s2474_s6 + $0x228] sm:$0xf]  ;;  %v2003_v29 = vld [vmem:[%s2474_s6 + $0x234] sm:$0xf0]  ;;  %v1441_v32 = vor.u32 %v1939_v23, %v1440_v22  ;;  %v1569_v35 = vor.u32 %v1971_v27, %v1568_v24  ;;  %v1953_v7 = vld [vmem:[%s2474_s6 + $0xac] sm:$0xf] }
  0x72   : > { %1171 = vmatpush.bf16.msra.mxu1 %v1649_v33  ;;  %v1824_v30 = vld [vmem:[%s2474_s6 + $0x328] sm:$0xf]  ;;  %v2035_v31 = vld [vmem:[%s2474_s6 + $0x334] sm:$0xf0]  ;;  %v1697_v36 = vor.u32 %v2003_v29, %v1696_v28  ;;  %v1506_v10 = vld [vmem:[%s2474_s6 + $0xb8] sm:$0xf0] }
  0x73   : > { %1184 = vmatpush.bf16.msra.mxu2 %v1777_v34  ;;  %v1424_v33 = vld [vmem:[%s2474_s6 + $0x8] sm:$0xf]  ;;  %v1935_v34 = vld [vmem:[%s2474_s6 + $0x14] sm:$0xf0]  ;;  %v1825_v40 = vor.u32 %v2035_v31, %v1824_v30  ;;  %v1985_v11 = vld [vmem:[%s2474_s6 + $0x1ac] sm:$0xf] }
  0x74   : > { %1197 = vmatpush.bf16.msra.mxu3 %v1905_v38  ;;  %v1552_v37 = vld [vmem:[%s2474_s6 + $0x108] sm:$0xf]  ;;  %v1967_v38 = vld [vmem:[%s2474_s6 + $0x114] sm:$0xf0]  ;;  %v1425_v47 = vor.u32 %v1935_v34, %v1424_v33  ;;  %v1634_v13 = vld [vmem:[%s2474_s6 + $0x1b8] sm:$0xf0] }
  0x75   : > { %1159 = vmatpush.bf16.msra.mxu0 %v1505_v44  ;;  %v1680_v39 = vld [vmem:[%s2474_s6 + $0x208] sm:$0xf]  ;;  %v1999_v41 = vld [vmem:[%s2474_s6 + $0x214] sm:$0xf0]  ;;  %v1961_v44 = vld [vmem:[%s2474_s6 + $0xec] sm:$0xf]  ;;  %v1553_v51 = vor.u32 %v1967_v38, %v1552_v37 }
  0x76   : > { %1172 = vmatpush.bf16.msra.mxu1 %v1633_v45  ;;  %v1808_v42 = vld [vmem:[%s2474_s6 + $0x308] sm:$0xf]  ;;  %v2031_v43 = vld [vmem:[%s2474_s6 + $0x314] sm:$0xf0]  ;;  %v1538_v45 = vld [vmem:[%s2474_s6 + $0xf8] sm:$0xf0]  ;;  %v1681_v52 = vor.u32 %v1999_v41, %v1680_v39 }
  0x77   : > { %1185 = vmatpush.bf16.msra.mxu2 %v1761_v46  ;;  %v1993_v46 = vld [vmem:[%s2474_s6 + $0x1ec] sm:$0xf]  ;;  %v1809_v55 = vor.u32 %v2031_v43, %v1808_v42  ;;  %v1762_v15 = vld [vmem:[%s2474_s6 + $0x2b8] sm:$0xf0] }
  0x78   : > { %1198 = vmatpush.bf16.msra.mxu3 %v1889_v50  ;;  %v1794_v50 = vld [vmem:[%s2474_s6 + $0x2f8] sm:$0xf0]  ;;  %v2017_v14 = vld [vmem:[%s2474_s6 + $0x2ac] sm:$0xf] }
  0x79   : > { %1160 = vmatpush.bf16.msra.mxu0 %v1489_v56  ;;  %v1541_v56 = vor.u32 %v1961_v44, %v1538_v45  ;;  %v2049_v16 = vld [vmem:[%s2474_s6 + $0x3ac] sm:$0xf]  ;;  %v1890_v17 = vld [vmem:[%s2474_s6 + $0x3b8] sm:$0xf0] }
  0x7a   : > { %1173 = vmatpush.bf16.msra.mxu1 %v1617_v57  ;;  %v1669_v57 = vor.u32 %v1993_v46, %v1666_v48  ;;  %v1949_v22 = vld [vmem:[%s2474_s6 + $0x8c] sm:$0xf]  ;;  %v1490_v23 = vld [vmem:[%s2474_s6 + $0x98] sm:$0xf0] }
  0x7b   : > { %1186 = vmatpush.bf16.msra.mxu2 %v1745_v58  ;;  %v1797_v58 = vor.u32 %v2025_v49, %v1794_v50  ;;  %v1981_v24 = vld [vmem:[%s2474_s6 + $0x18c] sm:$0xf]  ;;  %v1618_v27 = vld [vmem:[%s2474_s6 + $0x198] sm:$0xf0] }
  0x7c   : > { %1199 = vmatpush.bf16.msra.mxu3 %v1873_v62  ;;  %v1925_v62 = vor.u32 %v2057_v53, %v1922_v54  ;;  %v2013_v28 = vld [vmem:[%s2474_s6 + $0x28c] sm:$0xf]  ;;  %v1746_v29 = vld [vmem:[%s2474_s6 + $0x298] sm:$0xf0]  ;;  %v1621_v33 = vor.u32 %v1981_v24, %v1618_v27 }
  0x7d   : > { %1161 = vmatpush.bf16.msra.mxu0 %v1473_v4  ;;  %v1525_v4 = vor.u32 %v1957_v59, %v1522_v60  ;;  %v2045_v30 = vld [vmem:[%s2474_s6 + $0x38c] sm:$0xf]  ;;  %v1874_v31 = vld [vmem:[%s2474_s6 + $0x398] sm:$0xf0]  ;;  %v1749_v34 = vor.u32 %v2013_v28, %v1746_v29 }
  0x7e   : > { %1174 = vmatpush.bf16.msra.mxu1 %v1601_v5  ;;  %v1653_v5 = vor.u32 %v1989_v61, %v1650_v63  ;;  %v1977_v37 = vld [vmem:[%s2474_s6 + $0x16c] sm:$0xf]  ;;  %v1877_v38 = vor.u32 %v2045_v30, %v1874_v31  ;;  %v1602_v39 = vld [vmem:[%s2474_s6 + $0x178] sm:$0xf0] }
  0x7f   : > { %1187 = vmatpush.bf16.msra.mxu2 %v1729_v6  ;;  %v1781_v6 = vor.u32 %v2021_v0, %v1778_v1  ;;  %v1730_v41 = vld [vmem:[%s2474_s6 + $0x278] sm:$0xf0]  ;;  %v2041_v42 = vld [vmem:[%s2474_s6 + $0x36c] sm:$0xf]  ;;  %v1605_v45 = vor.u32 %v1977_v37, %v1602_v39 }
  0x80   : > { %1200 = vmatpush.bf16.msra.mxu3 %v1857_v12  ;;  %v1909_v12 = vor.u32 %v2053_v2, %v1906_v3  ;;  %v1858_v43 = vld [vmem:[%s2474_s6 + $0x378] sm:$0xf0]  ;;  %v1973_v49 = vld [vmem:[%s2474_s6 + $0x14c] sm:$0xf] }
  0x81   : > { %1162 = vmatpush.bf16.msra.mxu0 %v1457_v19  ;;  %v1509_v19 = vor.u32 %v1953_v7, %v1506_v10  ;;  %v1458_v48 = vld [vmem:[%s2474_s6 + $0x58] sm:$0xf0]  ;;  %v1861_v50 = vor.u32 %v2041_v42, %v1858_v43  ;;  %v2037_v54 = vld [vmem:[%s2474_s6 + $0x34c] sm:$0xf] }
  0x82   : > { %1175 = vmatpush.bf16.msra.mxu1 %v1585_v20  ;;  %v1637_v20 = vor.u32 %v1985_v11, %v1634_v13  ;;  %v1714_v53 = vld [vmem:[%s2474_s6 + $0x258] sm:$0xf0]  ;;  %v1937_v59 = vld [vmem:[%s2474_s6 + $0x2c] sm:$0xf] }
  0x83   : > { %1188 = vmatpush.bf16.msra.mxu2 %v1713_v21  ;;  %v1765_v21 = vor.u32 %v2017_v14, %v1762_v15  ;;  %v1442_v60 = vld [vmem:[%s2474_s6 + $0x38] sm:$0xf0]  ;;  %v1969_v61 = vld [vmem:[%s2474_s6 + $0x12c] sm:$0xf] }
  0x84   : > { %1201 = vmatpush.bf16.msra.mxu3 %v1841_v26  ;;  %v1893_v26 = vor.u32 %v2049_v16, %v1890_v17  ;;  %v1570_v63 = vld [vmem:[%s2474_s6 + $0x138] sm:$0xf0]  ;;  %v2001_v0 = vld [vmem:[%s2474_s6 + $0x22c] sm:$0xf] }
  0x85   : > { %1163 = vmatpush.bf16.msra.mxu0 %v1441_v32  ;;  %v1493_v32 = vor.u32 %v1949_v22, %v1490_v23  ;;  %v1698_v1 = vld [vmem:[%s2474_s6 + $0x238] sm:$0xf0]  ;;  %v2033_v2 = vld [vmem:[%s2474_s6 + $0x32c] sm:$0xf]  ;;  %v403_v23 = vld [vmem:[%s235_s11] sm:$0xf] }
  0x86   : > { %1176 = vmatpush.bf16.msra.mxu1 %v1569_v35  ;;  %v1945_v35 = vld [vmem:[%s2474_s6 + $0x6c] sm:$0xf]  ;;  %v1826_v3 = vld [vmem:[%s2474_s6 + $0x338] sm:$0xf0]  ;;  %v405_v24 = vperm.slane %v403_v23, 0 }
  0x87   : > { %1189 = vmatpush.bf16.msra.mxu2 %v1697_v36  ;;  %v1474_v36 = vld [vmem:[%s2474_s6 + $0x78] sm:$0xf0]  ;;  %v1933_v7 = vld [vmem:[%s2474_s6 + $0xc] sm:$0xf] }
  0x88   : > { %1202 = vmatpush.bf16.msra.mxu3 %v1825_v40  ;;  %v2009_v40 = vld [vmem:[%s2474_s6 + $0x26c] sm:$0xf]  ;;  %v1477_v44 = vor.u32 %v1945_v35, %v1474_v36  ;;  %v1426_v10 = vld [vmem:[%s2474_s6 + $0x18] sm:$0xf0] }
  0x89   : > { %1164 = vmatpush.bf16.msra.mxu0 %v1425_v47  ;;  %v1733_v46 = vor.u32 %v2009_v40, %v1730_v41  ;;  %v1941_v47 = vld [vmem:[%s2474_s6 + $0x4c] sm:$0xf]  ;;  %v1554_v13 = vld [vmem:[%s2474_s6 + $0x118] sm:$0xf0] }
  0x8a   : > { %1177 = vmatpush.bf16.msra.mxu1 %v1553_v51  ;;  %v1586_v51 = vld [vmem:[%s2474_s6 + $0x158] sm:$0xf0]  ;;  %v1965_v11 = vld [vmem:[%s2474_s6 + $0x10c] sm:$0xf] }
  0x8b   : > { %1190 = vmatpush.bf16.msra.mxu2 %v1681_v52  ;;  %v2005_v52 = vld [vmem:[%s2474_s6 + $0x24c] sm:$0xf]  ;;  %v1682_v15 = vld [vmem:[%s2474_s6 + $0x218] sm:$0xf0] }
  0x8c   : > { %1203 = vmatpush.bf16.msra.mxu3 %v1809_v55  ;;  %1165 = vmatmul.bf16.vlgmr.msra.gmra.mxu0 %v2582_v18  ;;  %v1842_v55 = vld [vmem:[%s2474_s6 + $0x358] sm:$0xf0]  ;;  %v1997_v14 = vld [vmem:[%s2474_s6 + $0x20c] sm:$0xf] }
  0x8d   : > { %1209 = vmatpush.bf16.msrb.mxu0 %v1541_v56  ;;  %1178 = vmatmul.bf16.vlgmr.msra.gmra.mxu1 %v2587_v25  ;;  %v1461_v56 = vor.u32 %v1941_v47, %v1458_v48  ;;  %v2029_v16 = vld [vmem:[%s2474_s6 + $0x30c] sm:$0xf]  ;;  %v1810_v17 = vld [vmem:[%s2474_s6 + $0x318] sm:$0xf0]  ;;  %v407_v47 = vperm.slane %v403_v23, 2 }
  0x8e   : > { %1222 = vmatpush.bf16.msrb.mxu1 %v1669_v57  ;;  %1191 = vmatmul.bf16.vlgmr.msra.gmra.mxu2 %v2571_v8  ;;  %v1589_v57 = vor.u32 %v1973_v49, %v1586_v51  ;;  %v1813_v22 = vor.u32 %v2029_v16, %v1810_v17 }
  0x8f   : > { %1235 = vmatpush.bf16.msrb.mxu2 %v1797_v58  ;;  %1204 = vmatmul.bf16.vlgmr.msra.gmra.mxu3 %v2573_v9  ;;  %v1717_v58 = vor.u32 %v2005_v52, %v1714_v53 }
  0x90   : > { %1248 = vmatpush.bf16.msrb.mxu3 %v1925_v62  ;;  %v1845_v62 = vor.u32 %v2037_v54, %v1842_v55 }
  0x91   : > { %1210 = vmatpush.bf16.msrb.mxu0 %v1525_v4  ;;  %v1445_v4 = vor.u32 %v1937_v59, %v1442_v60  ;;  %v408_v60 = vperm.slane %v403_v23, 3 }
  0x92   : > { %1223 = vmatpush.bf16.msrb.mxu1 %v1653_v5  ;;  %v1573_v5 = vor.u32 %v1969_v61, %v1570_v63 }
  0x93   : > { %1236 = vmatpush.bf16.msrb.mxu2 %v1781_v6  ;;  %v1701_v6 = vor.u32 %v2001_v0, %v1698_v1 }
  0x94   : > { %1249 = vmatpush.bf16.msrb.mxu3 %v1909_v12  ;;  %v1829_v12 = vor.u32 %v2033_v2, %v1826_v3 }
  0x95   : > { %1211 = vmatpush.bf16.msrb.mxu0 %v1509_v19  ;;  %v1429_v19 = vor.u32 %v1933_v7, %v1426_v10 }
  0x96   : > { %1224 = vmatpush.bf16.msrb.mxu1 %v1637_v20  ;;  %v1557_v20 = vor.u32 %v1965_v11, %v1554_v13 }
  0x97   : > { %1237 = vmatpush.bf16.msrb.mxu2 %v1765_v21  ;;  %v1685_v21 = vor.u32 %v1997_v14, %v1682_v15 }
  0x98   : > { %1250 = vmatpush.bf16.msrb.mxu3 %v1893_v26 }
  0x99   : > { %1212 = vmatpush.bf16.msrb.mxu0 %v1493_v32 }
  0x9a   : > { %1225 = vmatpush.bf16.msrb.mxu1 %v1621_v33 }
  0x9b   : > { %1238 = vmatpush.bf16.msrb.mxu2 %v1749_v34  ;;  %v406_v34 = vperm.slane %v403_v23, 1 }
  0x9c   : > { %1251 = vmatpush.bf16.msrb.mxu3 %v1877_v38 }
  0x9d   : > { %1213 = vmatpush.bf16.msrb.mxu0 %v1477_v44 }
  0x9e   : > { %1226 = vmatpush.bf16.msrb.mxu1 %v1605_v45 }
  0x9f   : > { %1239 = vmatpush.bf16.msrb.mxu2 %v1733_v46 }
  0xa0   : > { %1252 = vmatpush.bf16.msrb.mxu3 %v1861_v50 }
  0xa1   : > { %1214 = vmatpush.bf16.msrb.mxu0 %v1461_v56 }
  0xa2   : > { %1227 = vmatpush.bf16.msrb.mxu1 %v1589_v57 }
  0xa3   : > { %1240 = vmatpush.bf16.msrb.mxu2 %v1717_v58 }
  0xa4   : > { %1253 = vmatpush.bf16.msrb.mxu3 %v1845_v62 }
  0xa5   : > { %1215 = vmatpush.bf16.msrb.mxu0 %v1445_v4 }
  0xa6   : > { %1228 = vmatpush.bf16.msrb.mxu1 %v1573_v5 }
  0xa7   : > { %1241 = vmatpush.bf16.msrb.mxu2 %v1701_v6 }
  0xa8   : > { %1254 = vmatpush.bf16.msrb.mxu3 %v1829_v12 }
  0xa9   : > { %1216 = vmatpush.bf16.msrb.mxu0 %v1429_v19 }
  0xaa   : > { %1229 = vmatpush.bf16.msrb.mxu1 %v1557_v20 }
  0xab   : > { %1242 = vmatpush.bf16.msrb.mxu2 %v1685_v21 }
  0xac   : > { %1255 = vmatpush.bf16.msrb.mxu3 %v1813_v22  ;;  %1217 = vmatmul.bf16.vlgmr.msrb.gmra.mxu0 %v2582_v18 }
  0xad   : > { %1230 = vmatmul.bf16.vlgmr.msrb.gmra.mxu1 %v2587_v25 }
  0xae   : > { %1243 = vmatmul.bf16.vlgmr.msrb.gmra.mxu2 %v2571_v8 }
  0xaf   : > { %1256 = vmatmul.bf16.vlgmr.msrb.gmra.mxu3 %v2573_v9 }
  0xce   : > { %v1075_v28 = vpop.f32.mrf.mxu1 }
  0xcf   : > { %v1062_v26 = vpop.f32.mrf.mxu0 }
  0xd0   : > { %v1063_v27 = vadd.f32 %v1062_v26, %v405_v24 }
  0xd2   : > { %v1076_v29 = vadd.f32 %v1075_v28, %v1063_v27  ;;  %v1101_v31 = vpop.f32.mrf.mxu3 }
  0xd3   : > { %v1088_v30 = vpop.f32.mrf.mxu2 }
  0xd4   : > { %v1089_v32 = vadd.f32 %v1088_v30, %v1076_v29 }
  0xd6   : > { %v1102_v33 = vadd.f32 %v1101_v31, %v1089_v32  ;;  %v1077_v8 = vpop.f32.mrf.mxu1 }
  0xd7   : > { %v1064_v18 = vpop.f32.mrf.mxu0 }
  0xd8   : > { %1261 = vst [vmem:[%s2762_s28] sm:$0xff] %v1102_v33 }
  0xda   : > { %v1103_v25 = vpop.f32.mrf.mxu3 }
  0xdb   : > { %v1090_v9 = vpop.f32.mrf.mxu2 }
  0xe9   : > { %v1114_v35 = vpop.f32.mrf.mxu0 }
  0xea   : > { %v1115_v36 = vadd.f32 %v1114_v35, %v406_v34  ;;  %v1127_v37 = vpop.f32.mrf.mxu1 }
  0xec   : > { %v1128_v38 = vadd.f32 %v1127_v37, %v1115_v36 }
  0xf1   : > { %v1140_v39 = vpop.f32.mrf.mxu2  ;;  %v1116_v43 = vpop.f32.mrf.mxu0 }
  0xf2   : > { %v1141_v40 = vadd.f32 %v1140_v39, %v1128_v38  ;;  %v1153_v41 = vpop.f32.mrf.mxu3  ;;  %v1129_v44 = vpop.f32.mrf.mxu1 }
  0xf4   : > { %v1154_v42 = vadd.f32 %v1153_v41, %v1141_v40 }
  0xf6   : > { %1262 = vst [vmem:[%s2762_s28 + $0x8] sm:$0xff] %v1154_v42 }
  0xf9   : > { %v1142_v45 = vpop.f32.mrf.mxu2 }
  0xfa   : > { %v1155_v46 = vpop.f32.mrf.mxu3 }
 0x109   : > { %v1166_v48 = vpop.f32.mrf.mxu0 }
 0x10a   : > { %v1167_v49 = vadd.f32 %v1166_v48, %v407_v47  ;;  %v1179_v50 = vpop.f32.mrf.mxu1 }
 0x10c   : > { %v1180_v51 = vadd.f32 %v1179_v50, %v1167_v49 }
 0x111   : > { %v1192_v52 = vpop.f32.mrf.mxu2  ;;  %v1168_v56 = vpop.f32.mrf.mxu0 }
 0x112   : > { %v1193_v53 = vadd.f32 %v1192_v52, %v1180_v51  ;;  %v1205_v54 = vpop.f32.mrf.mxu3  ;;  %v1181_v57 = vpop.f32.mrf.mxu1 }
 0x114   : > { %v1206_v55 = vadd.f32 %v1205_v54, %v1193_v53 }
 0x116   : > { %1263 = vst [vmem:[%s2762_s28 + $0x10] sm:$0xff] %v1206_v55 }
 0x119   : > { %v1194_v58 = vpop.f32.mrf.mxu2 }
 0x11a   : > { %v1207_v59 = vpop.f32.mrf.mxu3 }
 0x129   : > { %v1218_v61 = vpop.f32.mrf.mxu0 }
 0x12a   : > { %v1219_v62 = vadd.f32 %v1218_v61, %v408_v60  ;;  %v1231_v63 = vpop.f32.mrf.mxu1 }
 0x12c   : > { %v1232_v0 = vadd.f32 %v1231_v63, %v1219_v62 }
 0x131   : > { %v1244_v1 = vpop.f32.mrf.mxu2  ;;  %v1220_v4 = vpop.f32.mrf.mxu0 }
 0x132   : > { %v1245_v2 = vadd.f32 %v1244_v1, %v1232_v0  ;;  %v1257_v3 = vpop.f32.mrf.mxu3  ;;  %v1233_v5 = vpop.f32.mrf.mxu1 }
 0x134   : > { %v1258_v6 = vadd.f32 %v1257_v3, %v1245_v2 }
 0x136   : > { %1264 = vst [vmem:[%s2762_s28 + $0x18] sm:$0xff] %v1258_v6 }
 0x137   : > { %2259 = shalt.err (!%p2256_p13)
}
 0x138   : > { %2069 = dma.vmem_to_hbm [thread:$0]  (%p2434_p0), %s1282_s10, 512, %s1284_s19, %s1266_s24  }
 0x139   : > { %v1246_v7 = vpop.f32.mrf.mxu2 }
 0x13a   : > { %v1259_v10 = vpop.f32.mrf.mxu3 }
 0x13b PF: > { %s1295_s29 = sand.u32 1, %s2298_s12   ;;  %p2083_p4 = pnand %p1403_p3, %p2438_p2 }
 0x13c   : > { %s1296_s11 = scalar_lea.sflag [#allocation4], %s1295_s29 }
 0x13d   : > { %p2084_p5 = pneg %p2083_p4 }
 0x13f   : > { %2293 = dma.done.wait (%p2084_p5), %s1296_s11, 512  }
 0x140   : > { %2295 = vsyncadd (%p2084_p5), %s1296_s11, 4294966784  ;;  %s20_s17 = sadd.s32 1, %s2318_s17   ;;  %s2817_s12 = smov %s2302_s13 }
 0x141   : > { %p17_p1 = scmp.ge.s32.totalorder %s20_s17, 4   ;;  %s2818_s13 = smov %s2306_s14 }
 0x142   : > { %s2819_s14 = smov %s2396_s25  ;;  %s2820_s15 = smov %s2314_s16 }
 0x143   : > { %s2821_s16 = smov %s2823_s18  ;;  %19 = sbr.rel (!%p17_p1) target bundleno = 7 (0x7), region = 94 }
 0x148   :  { %1302 = vsyncpa [#allocation3], 1 }
 0x149   :  { %1304 = vsyncpa [#allocation3 + $0x1], 1 }
 0x14a   :  { %1305 = vsyncpa [#allocation6], 1 }
 0x14b   :  { %1307 = vsyncpa [#allocation6 + $0x1], 1 }
 0x14c   :  { %1308 = vsyncpa [#allocation4], 1 }
 0x14d   :  { %1310 = vsyncpa [#allocation4 + $0x1], 1 }

</bundles_post_ra>
